<compile_context>
chip_gen: v7x
topology: tpu7x:2x2x1
jax: 0.10.0
libtpu: 0.0.40
codegen_flags: <defaults>
</compile_context>

<pallas_src>
import functools

import jax
import jax.numpy as jnp
from jax.experimental import pallas as pl
from jax.experimental.pallas import tpu as pltpu


def _round_up(x, m):
    return ((x + m - 1) // m) * m


def bow_kernel(x_ref, w_ref, b_ref, o_ref, acc_ref, *,
               num_labels, t_k, k_valid):
    """One (batch tile i, contraction tile k) grid step.

    x_ref:   (tB, tK)  f32 block of bow_vec
    w_ref:   (Kp, L)   f32 W^T (zero rows padded up to Kp), resident in VMEM
    b_ref:   (1, L)    f32 bias, resident in VMEM
    o_ref:   (tB, 128) f32 lane-dense output block (labels in lanes [0, L))
    acc_ref: (tB, L)   f32 accumulator scratch (lives across the K axis)
    """
    k = pl.program_id(1)
    nk = pl.num_programs(1)

    @pl.when(k == 0)
    def _init():
        acc_ref[...] = jnp.zeros_like(acc_ref)

    x = x_ref[...]
    if k_valid % t_k:
        # The last K block of x reaches past the true feature dim; those
        # padding columns hold unspecified values, so zero them (W's matching
        # rows are already zero) to keep the contraction exact.
        col = jax.lax.broadcasted_iota(jnp.int32, x.shape, 1) + k * t_k
        x = jnp.where(col < k_valid, x, 0.0)

    start = pl.multiple_of(k * t_k, t_k)
    w = w_ref[pl.ds(start, t_k), :]                       # (tK, L) slice
    acc_ref[...] += jnp.dot(x, w, preferred_element_type=jnp.float32)

    @pl.when(k == nk - 1)
    def _finalize():
        logits = acc_ref[...] + b_ref[...]                # (tB, L) + (1, L)
        # Numerically-stable log_softmax over the true L labels (dim=1).
        m = jnp.max(logits, axis=-1, keepdims=True)
        shifted = logits - m
        lse = jnp.log(jnp.sum(jnp.exp(shifted), axis=-1, keepdims=True))
        logp = shifted - lse                              # (tB, L)
        # Lane-dense 128-wide store, then place the true labels in lanes 0..L.
        o_ref[...] = jnp.zeros_like(o_ref)
        o_ref[:, :num_labels] = logp


def bow_classifier(bow_vec, weight, bias, *, max_tk=2048):
    """Forward pass of BoWClassifier.

    bow_vec: [B, V+1] float32   (PyTorch 2-D input, passed untouched)
    weight:  [L, V+1] float32   (PyTorch nn.Linear layout)
    bias:    [L]      float32
    returns: [B, L]   float32   log-probabilities
    """
    B, F = bow_vec.shape
    L = weight.shape[0]
    Lp = 128                                  # lane-dense output width

    # Batch tile: multiple of 8 sublanes, capped at 256, and sized so the
    # "parallel" batch axis has >=2 tiles when B allows (v7x: 2 TensorCores).
    if B <= 8:
        t_b = B
    else:
        t_b = min(256, max(8, _round_up(-(-B // 2), 8)))
    grid_b = pl.cdiv(B, t_b)

    # Contraction tile: whole feature dim if small (full-array dims are exempt
    # from the (8,128) rule), else 2048 f32 -> ~2 MB x blocks, double-buffered,
    # safe under v7x's 64 MiB VMEM.  Raise max_tk on v6e/v5e (128 MiB) to
    # amortize per-step overhead further.
    t_k = F if F <= max_tk else max_tk
    grid_k = pl.cdiv(F, t_k)
    Kp = grid_k * t_k

    # Small resident operands: W^T zero-padded only along K (tiny pad on a
    # tiny array; the label dim stays unpadded at L), bias as a (1, L) row.
    w_t = weight.T                                        # (F, L)
    if Kp != F:
        w_t = jnp.pad(w_t, ((0, Kp - F), (0, 0)))
    b_row = bias.reshape(1, L)

    kernel = functools.partial(bow_kernel, num_labels=L, t_k=t_k, k_valid=F)

    out = pl.pallas_call(
        kernel,
        out_shape=jax.ShapeDtypeStruct((B, Lp), jnp.float32),
        grid=(grid_b, grid_k),
        in_specs=[
            pl.BlockSpec((t_b, t_k), lambda i, k: (i, k)),      # x tiles
            # Constant index_map -> W^T is DMA'd once and stays resident.
            # TODO(synk): use pipeline_mode=pl.Buffered(1) to drop the unused
            # second buffer once single-buffer pipeline_mode is verified on
            # the target jax build.
            pl.BlockSpec((Kp, L), lambda i, k: (0, 0)),
            pl.BlockSpec((1, L), lambda i, k: (0, 0)),          # bias
        ],
        out_specs=pl.BlockSpec((t_b, Lp), lambda i, k: (i, 0)),
        scratch_shapes=[pltpu.VMEM((t_b, L), jnp.float32)],
        compiler_params=pltpu.CompilerParams(
            dimension_semantics=("parallel", "arbitrary"),
            vmem_limit_bytes=48 * 1024 * 1024),
        cost_estimate=pl.CostEstimate(
            flops=2 * B * F * L,
            transcendentals=2 * B * L,
            bytes_accessed=4 * (B * F + Kp * L + L + B * Lp)),
    )(bow_vec, w_t, b_row)

    # Strip the lane padding (true labels live in lanes [0, L)).
    return out[:, :L]


def reference(bow_vec, weight, bias):
    logits = bow_vec @ weight.T + bias
    return jax.nn.log_softmax(logits, axis=1)


if __name__ == "__main__":
    # Small shapes consistent with the module: vocab_size=31 -> in_features=32,
    # num_labels=4, batch=8.
    vocab_size = 31
    num_labels = 4
    batch = 8
    in_features = vocab_size + 1

    key = jax.random.PRNGKey(0)
    k_x, k_w, k_b = jax.random.split(key, 3)

    # Deterministic synthetic parameters (nn.Linear-style uniform init range),
    # stored in PyTorch layout: weight [L, F], bias [L].
    bound = 1.0 / jnp.sqrt(in_features)
    weight = jax.random.uniform(
        k_w, (num_labels, in_features), jnp.float32, -bound, bound)
    bias = jax.random.uniform(
        k_b, (num_labels,), jnp.float32, -bound, bound)

    # Synthetic bag-of-words counts (non-negative floats).
    bow_vec = jax.random.uniform(
        k_x, (batch, in_features), jnp.float32, 0.0, 3.0)

    out = bow_classifier(bow_vec, weight, bias)
    jax.block_until_ready(out)

    ref = reference(bow_vec, weight, bias)
    assert out.shape == (batch, num_labels)
    assert jnp.allclose(out, ref, atol=1e-5, rtol=1e-5), (
        f"max err {jnp.max(jnp.abs(out - ref))}")

    print("KERNEL_OK")
</pallas_src>

<mosaic_0001>
module attributes {stable_mosaic.version = 11 : i64} {
  func.func @bow_kernel(%arg0: i32, %arg1: i32, %arg2: memref<8x32xf32, #tpu.memory_space<vmem>>, %arg3: memref<32x4xf32, #tpu.memory_space<vmem>>, %arg4: memref<1x4xf32, #tpu.memory_space<vmem>>, %arg5: memref<8x128xf32, #tpu.memory_space<vmem>>, %arg6: memref<8x4xf32, #tpu.memory_space<vmem>>) attributes {dimension_semantics = [#tpu.dimension_semantics<parallel>, #tpu.dimension_semantics<arbitrary>], iteration_bounds = array<i64: 1, 1>, scalar_prefetch = 0 : i64, scratch_operands = 1 : i64, tpu.core_type = #tpu.core_type<tc>, window_params = [{transform_indices = @transform_0, window_bounds = array<i64: 8, 32>}, {pipeline_mode = #tpu.pipeline_mode<synchronous>, transform_indices = @transform_1, window_bounds = array<i64: 32, 4>}, {pipeline_mode = #tpu.pipeline_mode<synchronous>, transform_indices = @transform_2, window_bounds = array<i64: 1, 4>}, {transform_indices = @transform_3, window_bounds = array<i64: 8, 128>}]} {
    %c0_i32 = arith.constant 0 : i32
    %0 = arith.cmpi eq, %arg1, %c0_i32 : i32
    %1 = arith.extui %0 : i1 to i32
    %c0_i32_0 = arith.constant 0 : i32
    %2 = arith.cmpi ne, %1, %c0_i32_0 : i32
    scf.if %2 {
      %cst_9 = arith.constant 0.000000e+00 : f32
      %15 = vector.broadcast %cst_9 : f32 to vector<8x4xf32>
      %c0_10 = arith.constant 0 : index
      %c0_11 = arith.constant 0 : index
      %16 = vector.load %arg6[%c0_10, %c0_11] : memref<8x4xf32, #tpu.memory_space<vmem>>, vector<8x4xf32>
      tpu.vector_store %arg6[%c0_10, %c0_11], %15 {strides = array<i32>} : memref<8x4xf32, #tpu.memory_space<vmem>>, vector<8x4xf32>,
    } else {
    }
    %c0 = arith.constant 0 : index
    %c0_1 = arith.constant 0 : index
    %3 = vector.load %arg2[%c0, %c0_1] : memref<8x32xf32, #tpu.memory_space<vmem>>, vector<8x32xf32>
    %c32_i32 = arith.constant 32 : i32
    %4 = arith.muli %arg1, %c32_i32 : i32
    %5 = tpu.assume_multiple %4, 32 : i32
    %6 = arith.index_cast %5 : i32 to index
    %c0_2 = arith.constant 0 : index
    %7 = vector.load %arg3[%6, %c0_2] : memref<32x4xf32, #tpu.memory_space<vmem>>, vector<32x4xf32>
    %c0_3 = arith.constant 0 : index
    %c0_4 = arith.constant 0 : index
    %8 = vector.load %arg6[%c0_3, %c0_4] : memref<8x4xf32, #tpu.memory_space<vmem>>, vector<8x4xf32>
    %cst = arith.constant dense<0.000000e+00> : vector<8x4xf32>
    %9 = tpu.matmul %3, %7, %cst {dimension_numbers = #tpu.dot_dimension_numbers<[1], [0], [0], [1], [0, 0, 1, 1], [], []>} : vector<8x32xf32>, vector<32x4xf32>, vector<8x4xf32> -> vector<8x4xf32>
    %10 = arith.addf %8, %9 : vector<8x4xf32>
    %c0_5 = arith.constant 0 : index
    %c0_6 = arith.constant 0 : index
    %11 = vector.load %arg6[%c0_5, %c0_6] : memref<8x4xf32, #tpu.memory_space<vmem>>, vector<8x4xf32>
    tpu.vector_store %arg6[%c0_5, %c0_6], %10 {strides = array<i32>} : memref<8x4xf32, #tpu.memory_space<vmem>>, vector<8x4xf32>,
    %c0_i32_7 = arith.constant 0 : i32
    %12 = arith.cmpi eq, %arg1, %c0_i32_7 : i32
    %13 = arith.extui %12 : i1 to i32
    %c0_i32_8 = arith.constant 0 : i32
    %14 = arith.cmpi ne, %13, %c0_i32_8 : i32
    scf.if %14 {
      %c0_9 = arith.constant 0 : index
      %c0_10 = arith.constant 0 : index
      %15 = vector.load %arg6[%c0_9, %c0_10] : memref<8x4xf32, #tpu.memory_space<vmem>>, vector<8x4xf32>
      %c0_11 = arith.constant 0 : index
      %c0_12 = arith.constant 0 : index
      %16 = vector.load %arg4[%c0_11, %c0_12] : memref<1x4xf32, #tpu.memory_space<vmem>>, vector<1x4xf32>
      %17 = vector.broadcast %16 : vector<1x4xf32> to vector<8x4xf32>
      %18 = arith.addf %15, %17 : vector<8x4xf32>
      %cst_13 = arith.constant dense<0xFF800000> : vector<8xf32>
      %19 = vector.multi_reduction <maximumf>, %18, %cst_13 [1] : vector<8x4xf32> to vector<8xf32>
      %20 = vector.shape_cast %19 : vector<8xf32> to vector<8x1xf32>
      %21 = vector.broadcast %20 : vector<8x1xf32> to vector<8x4xf32>
      %22 = arith.subf %18, %21 : vector<8x4xf32>
      %23 = math.exp %22 : vector<8x4xf32>
      %cst_14 = arith.constant dense<0.000000e+00> : vector<8xf32>
      %24 = vector.multi_reduction <add>, %23, %cst_14 [1] : vector<8x4xf32> to vector<8xf32>
      %25 = vector.shape_cast %24 : vector<8xf32> to vector<8x1xf32>
      %26 = math.log %25 : vector<8x1xf32>
      %27 = vector.broadcast %26 : vector<8x1xf32> to vector<8x4xf32>
      %28 = arith.subf %22, %27 : vector<8x4xf32>
      %cst_15 = arith.constant 0.000000e+00 : f32
      %29 = vector.broadcast %cst_15 : f32 to vector<8x128xf32>
      %c0_16 = arith.constant 0 : index
      %c0_17 = arith.constant 0 : index
      %30 = vector.load %arg5[%c0_16, %c0_17] : memref<8x128xf32, #tpu.memory_space<vmem>>, vector<8x128xf32>
      tpu.vector_store %arg5[%c0_16, %c0_17], %29 {strides = array<i32>} : memref<8x128xf32, #tpu.memory_space<vmem>>, vector<8x128xf32>,
      %c0_18 = arith.constant 0 : index
      %c0_19 = arith.constant 0 : index
      %31 = vector.load %arg5[%c0_18, %c0_19] : memref<8x128xf32, #tpu.memory_space<vmem>>, vector<8x4xf32>
      tpu.vector_store %arg5[%c0_18, %c0_19], %28 {strides = array<i32>} : memref<8x128xf32, #tpu.memory_space<vmem>>, vector<8x4xf32>,
    } else {
    }
    return
  }
  func.func @transform_0(%arg0: i32, %arg1: i32) -> (i32, i32) {
    %c0_i32 = arith.constant 0 : i32
    return %arg0, %arg1 : i32, i32
  }
  func.func @transform_1(%arg0: i32, %arg1: i32) -> (i32, i32) {
    %c0_i32 = arith.constant 0 : i32
    %c0_i32_0 = arith.constant 0 : i32
    %c0_i32_1 = arith.constant 0 : i32
    return %c0_i32, %c0_i32_0 : i32, i32
  }
  func.func @transform_2(%arg0: i32, %arg1: i32) -> (i32, i32) {
    %c0_i32 = arith.constant 0 : i32
    %c0_i32_0 = arith.constant 0 : i32
    %c0_i32_1 = arith.constant 0 : i32
    return %c0_i32, %c0_i32_0 : i32, i32
  }
  func.func @transform_3(%arg0: i32, %arg1: i32) -> (i32, i32) {
    %c0_i32 = arith.constant 0 : i32
    %c0_i32_0 = arith.constant 0 : i32
    return %arg0, %c0_i32 : i32, i32
  }
}

</mosaic_0001>

<bundles_post_ra>
// kernel: tpu_custom_call.1
= control target key start
LH: loop header
LB: loop body
LE: loop exit
PB: predicated region body
PF: predicated region fallthrough
CT: control target
= control target key end

     0   :  { %vm19_vm0 = vcmask 31744   ;;  %v202_v3 = vmov 0.0|0.0   ;;  %v203_v6 = vmov 0.0   ;;  %s261_s0 = inlined_call_operand.vmem [shape: f32[8,32], index: 0, kind: input, shape index: {}]   ;;  %s262_s1 = inlined_call_operand.vmem [shape: f32[32,4], index: 1, kind: input, shape index: {}]   ;;  %s263_s2 = inlined_call_operand.vmem [shape: f32[1,4], index: 2, kind: input, shape index: {}]   ;;  %s264_s3 = inlined_call_operand.hbm [shape: f32[8,128], index: 3, kind: output, shape index: {}]  }
   0x1   :  { %v24_v0 = vld [vmem:[%s262_s1] sm:$0xff]  ;;  %v25_v1 = vld [vmem:[%s262_s1 + $0x8] sm:$0xff]  ;;  %v26_v2 = vld [vmem:[%s262_s1 + $0x10] sm:$0xff]  ;;  %164 = vmatprep.subr.bf16.mxu0 %v202_v3  ;;  %20 = vst.msk [vmem:[#allocation2] sm:$0xff] %vm19_vm0, %v203_v6 }
   0x2   :  { %v165_v4 = vpack.c.bf16 %v25_v1, %v24_v0  ;;  %v27_v5 = vld [vmem:[%s262_s1 + $0x18] sm:$0xff]  ;;  %130 = vst [vmem:[#allocation3] sm:$0xff] %v203_v6 }
   0x3   :  { %8 = vsyncpa [#allocation4], 0  ;;  %vm204_vm1 = vmmov 0   ;;  %v168_v7 = vpack.c.bf16 %v27_v5, %v26_v2  ;;  %v21_v8 = vld [vmem:[%s261_s0] sm:$0xff]  ;;  %vm29_vm2 = vcmask 261120   ;;  %s205_s0 = smov [#allocation3]  }
   0x4   :  { %161 = vmatprep.mubr.msk.f32.mxu0 %vm204_vm1, %v203_v6  ;;  %166 = vmatpush3.bf16.msra.mxu0 %v165_v4  ;;  %v147_v13 = vld [vmem:[%s263_s2] ss:$0 sm:$0xff]  ;;  %s138_s23 = sshll.u32 %s205_s0, 4  ;;  %s139_s23 = int_to_ptr.vmem [resolvable:$true] %s138_s23 }
   0x5   :  { %167 = vmatprep.subr.bf16.mxu0 %v202_v3  ;;  %s178_s2 = scalar_lea.vmem %s139_s23, 128  ;;  %p183_p1 = scmp.lt.s32.totalorder %s139_s23, %s139_s23 }
   0x6   :  { %p179_p0 = scmp.ne.s32.totalorder %s139_s23, %s178_s2  ;;  %p184_p2 = scmp.lt.s32.totalorder %s178_s2, %s178_s2 }
   0x8   :  { %169 = vmatpush3.bf16.msra.mxu0 %v168_v7  ;;  %v28_v9 = vld [vmem:[#allocation2] sm:$0xff]  ;;  %p185_p3 = por %p184_p2, %p183_p1 }
   0xa   :  { %p186_p4 = pnand %p185_p3, %p179_p0 }
   0xb   :  { %162 = vmatmul.mubr.msk.f32.vlgmr.msra.gmra.mrb[0].mxu0 %vm29_vm2, %v21_v8 }
  0xde   :  { %v99_v10 = vpop.f32.mrb[0].mxu0 }
  0xdf   :  { %v103_v11 = vadd.f32 %v99_v10, %v28_v9  ;;  %v163_v12 = vpop.f32.mrb[1].mxu0 }
  0xe1   :  { %105 = vst.msk [vmem:[#allocation2] sm:$0xff] %vm19_vm0, %v103_v11 }
  0xe8   :  { %v109_v14 = vld [vmem:[#allocation2] sm:$0xff] }
  0xe9   :  { %v117_v15 = vadd.f32 %v147_v13, %v109_v14 }
  0xeb   :  { %v118_v16 = vsel %vm19_vm0, %v117_v15, -inf }
  0xec   :  { %119 = vmax.xlane.f32.xlu0 %v118_v16 }
 0x179   :  { %v120_v17 = vpop.xlane.xlu0 %119 }
 0x17a   :  { %v121_v18 = vsub.f32 %v117_v15, %v120_v17 }
 0x17c   :  { %v122_v19 = vmul.f32 1.442695, %v121_v18 }
 0x17e   :  { %174 = vpow2.f32 %v122_v19 }
 0x188   :  { %v175_v20 = vpop.eup %174 }
 0x189   :  { %v124_v21 = vsel %vm19_vm0, %v175_v20, 0.0 }
 0x18a   :  { %125 = vadd.xlane.f32.xlu0 %v124_v21 }
 0x217   :  { %v126_v22 = vpop.xlane.xlu0 %125 }
 0x218   :  { %176 = vlog2.f32 %v126_v22 }
 0x222   :  { %v177_v23 = vpop.eup %176 }
 0x223   :  { %v128_v24 = vmul.f32 0.6931472, %v177_v23 }
 0x225   :  { %v129_v25 = vsub.f32 %v121_v18, %v128_v24 }
 0x227   :  { %131 = vst.msk [vmem:[#allocation3] sm:$0xff] %vm19_vm0, %v129_v25 }
 0x228   :  { %189 = shalt.err (!%p186_p4)
}
 0x229   :  { %s190_s26 = scalar_lea.hbm %s264_s3, 128 }
 0x22a   :  { %p191_p5 = scmp.ne.s32.totalorder %s264_s3, %s190_s26  ;;  %p194_p6 = scmp.lt.u32.totalorder %s190_s26, %s264_s3 }
 0x22c   :  { %p196_p7 = pnand %p194_p6, %p191_p5 }
 0x22e   :  { %199 = shalt.err (!%p196_p7)
}
 0x22f   :  { %141 = dma.vmem_to_hbm [thread:$0]  %s139_s23, 128, %s264_s3, [#allocation4]  }
 0x230   :  { %200 = dma.done.wait [#allocation4], 128  }
 0x231   :  { %201 = vsyncadd [#allocation4], 4294967168 }
 0x232   :  { %145 = vsyncpa [#allocation4], 1 }

</bundles_post_ra>
